<compile_context>
chip_gen: v7x
topology: tpu7x:2x2x1
jax: 0.10.0
libtpu: 0.0.40
codegen_flags: <defaults>
</compile_context>

<pallas_src>
import math
import functools

import jax
import jax.numpy as jnp
from jax.experimental import pallas as pl
from jax.experimental.pallas import tpu as pltpu


def _choose_block_b(B, T, target_rows=512):
    """Largest batch block whose rows fit `target_rows`, preferring >=2 grid steps
    so both TensorCores get work on v7x."""
    divs = [d for d in range(1, B + 1) if B % d == 0]
    fits = [d for d in divs if d * T <= target_rows] or [1]
    cand = [d for d in fits if B // d >= 2] or fits
    return max(cand)


def _make_attn_kernel(M, N, C, num_heads, block_b, compute_dtype):
    T = M + N
    H = num_heads
    hs = C // H
    R = block_b * T
    scale = 1.0 / math.sqrt(hs)
    approx_recip = compute_dtype == jnp.bfloat16

    def kernel(z_ref, wqkv_ref, bqkv_ref, wproj_ref, bproj_ref, o1_ref, o2_ref):
        # z_ref: (block_b, T, C) already concatenated + cast in the wrapper.
        z2 = z_ref[...].reshape(R, C)                               # (R, C)

        # Fused QKV projection on all block_b*(M+N) rows at once (MXU-friendly).
        qkv = jnp.dot(z2, wqkv_ref[...],
                      preferred_element_type=jnp.float32)           # (R, 3C) f32
        qkv = qkv + bqkv_ref[...]                                    # bias in f32
        qkv = qkv.reshape(block_b, T, 3 * C)

        def split_heads(start):
            # Stack per-head lane slices into one merged batch dim (H*block_b, T, hs).
            parts = [qkv[:, :, start + h * hs: start + (h + 1) * hs]
                     for h in range(H)]
            return jnp.concatenate(parts, axis=0)                    # f32

        qh = (split_heads(0) * scale).astype(compute_dtype)          # (H*bb, T, hs)
        kh = split_heads(C).astype(compute_dtype)
        vh = split_heads(2 * C).astype(compute_dtype)

        # One batched 'nt' contraction for all heads / batch elements: no explicit .T.
        s = jnp.einsum('bqd,bkd->bqk', qh, kh,
                       preferred_element_type=jnp.float32)           # (H*bb, T, T) f32

        # Softmax in f32 (v5e has no bf16 VPU/EUP).
        s = s - jnp.max(s, axis=-1, keepdims=True)
        p = jnp.exp(s)
        denom = jnp.sum(p, axis=-1, keepdims=True)
        p = p * pl.reciprocal(denom, approx=approx_recip)

        o = jnp.einsum('bqk,bkd->bqd', p.astype(compute_dtype), vh,
                       preferred_element_type=jnp.float32)           # (H*bb, T, hs)

        # Re-assemble heads along the lane dim: (block_b, T, C).
        o = jnp.concatenate([o[h * block_b:(h + 1) * block_b] for h in range(H)],
                            axis=-1)
        o = o.reshape(R, C).astype(compute_dtype)

        # Output projection on all rows at once.
        out = jnp.dot(o, wproj_ref[...],
                      preferred_element_type=jnp.float32) + bproj_ref[...]
        out = out.reshape(block_b, T, C)

        o1_ref[...] = out[:, :M, :].astype(o1_ref.dtype)
        o2_ref[...] = out[:, M:, :].astype(o2_ref.dtype)

    return kernel


def multi_src_attention(x, y, w_qkv, b_qkv, w_proj, b_proj, *, num_heads,
                        compute_dtype=jnp.bfloat16, block_b=None):
    """x: (B, M, C), y: (B, N, C). Returns (out_1: (B, M, C), out_2: (B, N, C))."""
    B, M, C = x.shape
    _, N, _ = y.shape
    T = M + N
    assert C % num_heads == 0

    bb = block_b if block_b is not None else _choose_block_b(B, T)
    assert B % bb == 0

    # Concat once in XLA (not per grid step); cast MXU operands to compute_dtype.
    z = jnp.concatenate([x, y], axis=1).astype(compute_dtype)        # (B, T, C)
    wq = w_qkv.astype(compute_dtype)
    wp = w_proj.astype(compute_dtype)
    # Biases stay f32 (added to f32 accumulators); 2D for clean VMEM layout.
    bq = b_qkv.reshape(1, 3 * C).astype(jnp.float32)
    bp = b_proj.reshape(1, C).astype(jnp.float32)

    kernel = _make_attn_kernel(M, N, C, num_heads, bb, compute_dtype)

    grid_spec = pltpu.PrefetchScalarGridSpec(
        num_scalar_prefetch=0,
        grid=(B // bb,),
        in_specs=[
            pl.BlockSpec((bb, T, C), lambda b: (b, 0, 0)),           # z
            pl.BlockSpec((C, 3 * C), lambda b: (0, 0)),              # w_qkv
            pl.BlockSpec((1, 3 * C), lambda b: (0, 0)),              # b_qkv
            pl.BlockSpec((C, C), lambda b: (0, 0)),                  # w_proj
            pl.BlockSpec((1, C), lambda b: (0, 0)),                  # b_proj
        ],
        out_specs=[
            pl.BlockSpec((bb, M, C), lambda b: (b, 0, 0)),
            pl.BlockSpec((bb, N, C), lambda b: (b, 0, 0)),
        ],
    )

    out1, out2 = pl.pallas_call(
        kernel,
        out_shape=(
            jax.ShapeDtypeStruct((B, M, C), x.dtype),
            jax.ShapeDtypeStruct((B, N, C), y.dtype),
        ),
        grid_spec=grid_spec,
        compiler_params=pltpu.CompilerParams(
            dimension_semantics=("parallel",),
            vmem_limit_bytes=64 * 1024 * 1024),
    )(z, wq, bq, wp, bp)
    return out1, out2


def reference(x, y, w_qkv, b_qkv, w_proj, b_proj, num_heads):
    B, M, C = x.shape
    _, N, _ = y.shape
    hs = C // num_heads
    z = jnp.concatenate([x, y], axis=1)                               # (B, T, C)
    qkv = z @ w_qkv + b_qkv                                           # (B, T, 3C)
    q, k, v = jnp.split(qkv, 3, axis=-1)

    def to_heads(t):
        return t.reshape(B, M + N, num_heads, hs).transpose(0, 2, 1, 3)

    q, k, v = to_heads(q), to_heads(k), to_heads(v)
    s = jnp.einsum('bhqd,bhkd->bhqk', q, k) / math.sqrt(hs)
    p = jax.nn.softmax(s, axis=-1)
    o = jnp.einsum('bhqk,bhkd->bhqd', p, v)
    o = o.transpose(0, 2, 1, 3).reshape(B, M + N, C)
    out = o @ w_proj + b_proj
    return out[:, :M, :], out[:, M:, :]


if __name__ == "__main__":
    # Small shapes consistent with the module (n_embed divisible by num_heads).
    B, M, N = 2, 8, 8
    C, num_heads = 128, 4

    key = jax.random.PRNGKey(0)
    kx, ky, k1, k2, k3, k4 = jax.random.split(key, 6)

    x = jax.random.normal(kx, (B, M, C), dtype=jnp.float32)
    y = jax.random.normal(ky, (B, N, C), dtype=jnp.float32)

    # Deterministic parameter init (c_attn_1: C -> 3C, c_proj_1: C -> C), stored (in, out).
    w_qkv = jax.random.normal(k1, (C, 3 * C), dtype=jnp.float32) * (1.0 / math.sqrt(C))
    b_qkv = jax.random.normal(k2, (3 * C,), dtype=jnp.float32) * 0.02
    w_proj = jax.random.normal(k3, (C, C), dtype=jnp.float32) * (1.0 / math.sqrt(C))
    b_proj = jax.random.normal(k4, (C,), dtype=jnp.float32) * 0.02

    ref1, ref2 = reference(x, y, w_qkv, b_qkv, w_proj, b_proj, num_heads)

    # 1) f32 MXU operands + exact reciprocal: tight correctness check.
    run_f32 = jax.jit(functools.partial(
        multi_src_attention, num_heads=num_heads, compute_dtype=jnp.float32))
    o1, o2 = run_f32(x, y, w_qkv, b_qkv, w_proj, b_proj)
    jax.block_until_ready((o1, o2))
    assert o1.shape == (B, M, C) and o2.shape == (B, N, C)
    assert jnp.allclose(o1, ref1, atol=2e-4, rtol=2e-4)
    assert jnp.allclose(o2, ref2, atol=2e-4, rtol=2e-4)

    # 2) bf16 MXU operands (f32 accumulation / softmax) + approx reciprocal:
    #    fast path, checked against the f32 reference at bf16-appropriate tolerance.
    run_bf16 = jax.jit(functools.partial(
        multi_src_attention, num_heads=num_heads, compute_dtype=jnp.bfloat16))
    o1b, o2b = run_bf16(x, y, w_qkv, b_qkv, w_proj, b_proj)
    jax.block_until_ready((o1b, o2b))
    assert jnp.allclose(o1b, ref1, atol=5e-2, rtol=5e-2)
    assert jnp.allclose(o2b, ref2, atol=5e-2, rtol=5e-2)

    print("KERNEL_OK")
</pallas_src>

<mosaic_0001>
module attributes {stable_mosaic.version = 11 : i64} {
  func.func @kernel(%arg0: i32, %arg1: memref<1x16x128xf32, #tpu.memory_space<vmem>>, %arg2: memref<128x384xf32, #tpu.memory_space<vmem>>, %arg3: memref<1x384xf32, #tpu.memory_space<vmem>>, %arg4: memref<128x128xf32, #tpu.memory_space<vmem>>, %arg5: memref<1x128xf32, #tpu.memory_space<vmem>>, %arg6: memref<1x8x128xf32, #tpu.memory_space<vmem>>, %arg7: memref<1x8x128xf32, #tpu.memory_space<vmem>>) attributes {dimension_semantics = [#tpu.dimension_semantics<parallel>], iteration_bounds = array<i64: 2>, scalar_prefetch = 0 : i64, scratch_operands = 0 : i64, tpu.core_type = #tpu.core_type<tc>, window_params = [{transform_indices = @transform_0, window_bounds = array<i64: 1, 16, 128>}, {pipeline_mode = #tpu.pipeline_mode<synchronous>, transform_indices = @transform_1, window_bounds = array<i64: 128, 384>}, {pipeline_mode = #tpu.pipeline_mode<synchronous>, transform_indices = @transform_2, window_bounds = array<i64: 1, 384>}, {pipeline_mode = #tpu.pipeline_mode<synchronous>, transform_indices = @transform_3, window_bounds = array<i64: 128, 128>}, {pipeline_mode = #tpu.pipeline_mode<synchronous>, transform_indices = @transform_4, window_bounds = array<i64: 1, 128>}, {transform_indices = @transform_5, window_bounds = array<i64: 1, 8, 128>}, {transform_indices = @transform_6, window_bounds = array<i64: 1, 8, 128>}]} {
    %c0 = arith.constant 0 : index
    %c0_0 = arith.constant 0 : index
    %c0_1 = arith.constant 0 : index
    %0 = vector.load %arg1[%c0, %c0_0, %c0_1] : memref<1x16x128xf32, #tpu.memory_space<vmem>>, vector<1x16x128xf32>
    %1 = vector.shape_cast %0 : vector<1x16x128xf32> to vector<16x128xf32>
    %c0_2 = arith.constant 0 : index
    %c0_3 = arith.constant 0 : index
    %2 = vector.load %arg2[%c0_2, %c0_3] : memref<128x384xf32, #tpu.memory_space<vmem>>, vector<128x384xf32>
    %cst = arith.constant dense<0.000000e+00> : vector<16x384xf32>
    %3 = tpu.matmul %1, %2, %cst {dimension_numbers = #tpu.dot_dimension_numbers<[1], [0], [0], [1], [0, 0, 1, 1], [], []>} : vector<16x128xf32>, vector<128x384xf32>, vector<16x384xf32> -> vector<16x384xf32>
    %c0_4 = arith.constant 0 : index
    %c0_5 = arith.constant 0 : index
    %4 = vector.load %arg3[%c0_4, %c0_5] : memref<1x384xf32, #tpu.memory_space<vmem>>, vector<1x384xf32>
    %5 = vector.broadcast %4 : vector<1x384xf32> to vector<16x384xf32>
    %6 = arith.addf %3, %5 : vector<16x384xf32>
    %7 = vector.shape_cast %6 : vector<16x384xf32> to vector<1x16x384xf32>
    %8 = vector.extract_strided_slice %7 {offsets = [0, 0, 0], sizes = [1, 16, 32], strides = [1, 1, 1]} : vector<1x16x384xf32> to vector<1x16x32xf32>
    %9 = vector.extract_strided_slice %7 {offsets = [0, 0, 32], sizes = [1, 16, 32], strides = [1, 1, 1]} : vector<1x16x384xf32> to vector<1x16x32xf32>
    %10 = vector.extract_strided_slice %7 {offsets = [0, 0, 64], sizes = [1, 16, 32], strides = [1, 1, 1]} : vector<1x16x384xf32> to vector<1x16x32xf32>
    %11 = vector.extract_strided_slice %7 {offsets = [0, 0, 96], sizes = [1, 16, 32], strides = [1, 1, 1]} : vector<1x16x384xf32> to vector<1x16x32xf32>
    %12 = tpu.concatenate %8, %9, %10, %11 in 0 : vector<1x16x32xf32>, vector<1x16x32xf32>, vector<1x16x32xf32>, vector<1x16x32xf32> -> vector<4x16x32xf32>
    %cst_6 = arith.constant 0.176776692 : f32
    %13 = vector.broadcast %cst_6 : f32 to vector<4x16x32xf32>
    %14 = arith.mulf %12, %13 : vector<4x16x32xf32>
    %15 = vector.extract_strided_slice %7 {offsets = [0, 0, 128], sizes = [1, 16, 32], strides = [1, 1, 1]} : vector<1x16x384xf32> to vector<1x16x32xf32>
    %16 = vector.extract_strided_slice %7 {offsets = [0, 0, 160], sizes = [1, 16, 32], strides = [1, 1, 1]} : vector<1x16x384xf32> to vector<1x16x32xf32>
    %17 = vector.extract_strided_slice %7 {offsets = [0, 0, 192], sizes = [1, 16, 32], strides = [1, 1, 1]} : vector<1x16x384xf32> to vector<1x16x32xf32>
    %18 = vector.extract_strided_slice %7 {offsets = [0, 0, 224], sizes = [1, 16, 32], strides = [1, 1, 1]} : vector<1x16x384xf32> to vector<1x16x32xf32>
    %19 = tpu.concatenate %15, %16, %17, %18 in 0 : vector<1x16x32xf32>, vector<1x16x32xf32>, vector<1x16x32xf32>, vector<1x16x32xf32> -> vector<4x16x32xf32>
    %20 = vector.extract_strided_slice %7 {offsets = [0, 0, 256], sizes = [1, 16, 32], strides = [1, 1, 1]} : vector<1x16x384xf32> to vector<1x16x32xf32>
    %21 = vector.extract_strided_slice %7 {offsets = [0, 0, 288], sizes = [1, 16, 32], strides = [1, 1, 1]} : vector<1x16x384xf32> to vector<1x16x32xf32>
    %22 = vector.extract_strided_slice %7 {offsets = [0, 0, 320], sizes = [1, 16, 32], strides = [1, 1, 1]} : vector<1x16x384xf32> to vector<1x16x32xf32>
    %23 = vector.extract_strided_slice %7 {offsets = [0, 0, 352], sizes = [1, 16, 32], strides = [1, 1, 1]} : vector<1x16x384xf32> to vector<1x16x32xf32>
    %24 = tpu.concatenate %20, %21, %22, %23 in 0 : vector<1x16x32xf32>, vector<1x16x32xf32>, vector<1x16x32xf32>, vector<1x16x32xf32> -> vector<4x16x32xf32>
    "tpu.trace_start"() <{level = 10 : i32, message = "bqd,bkd->bqk"}> : () -> ()
    %cst_7 = arith.constant dense<0.000000e+00> : vector<4x16x16xf32>
    %25 = tpu.matmul %14, %19, %cst_7 {dimension_numbers = #tpu.dot_dimension_numbers<[2], [2], [1], [1], [0, 0, 0, 1, 1, 1], [0], [0]>} : vector<4x16x32xf32>, vector<4x16x32xf32>, vector<4x16x16xf32> -> vector<4x16x16xf32>
    "tpu.trace_stop"() : () -> ()
    %cst_8 = arith.constant dense<0xFF800000> : vector<4x16xf32>
    %26 = vector.multi_reduction <maximumf>, %25, %cst_8 [2] : vector<4x16x16xf32> to vector<4x16xf32>
    %27 = vector.shape_cast %26 : vector<4x16xf32> to vector<4x16x1xf32>
    %28 = vector.broadcast %27 : vector<4x16x1xf32> to vector<4x16x16xf32>
    %29 = arith.subf %25, %28 : vector<4x16x16xf32>
    %30 = math.exp %29 : vector<4x16x16xf32>
    %cst_9 = arith.constant dense<0.000000e+00> : vector<4x16xf32>
    %31 = vector.multi_reduction <add>, %30, %cst_9 [2] : vector<4x16x16xf32> to vector<4x16xf32>
    %32 = vector.shape_cast %31 : vector<4x16xf32> to vector<4x16x1xf32>
    %33 = tpu.reciprocal %32 : vector<4x16x1xf32> -> vector<4x16x1xf32>
    %34 = vector.broadcast %33 : vector<4x16x1xf32> to vector<4x16x16xf32>
    %35 = arith.mulf %30, %34 : vector<4x16x16xf32>
    "tpu.trace_start"() <{level = 10 : i32, message = "bqk,bkd->bqd"}> : () -> ()
    %cst_10 = arith.constant dense<0.000000e+00> : vector<4x16x32xf32>
    %36 = tpu.matmul %35, %24, %cst_10 {dimension_numbers = #tpu.dot_dimension_numbers<[2], [1], [1], [2], [0, 0, 0, 1, 1, 2], [0], [0]>} : vector<4x16x16xf32>, vector<4x16x32xf32>, vector<4x16x32xf32> -> vector<4x16x32xf32>
    "tpu.trace_stop"() : () -> ()
    %37 = vector.extract_strided_slice %36 {offsets = [0, 0, 0], sizes = [1, 16, 32], strides = [1, 1, 1]} : vector<4x16x32xf32> to vector<1x16x32xf32>
    %38 = vector.extract_strided_slice %36 {offsets = [1, 0, 0], sizes = [1, 16, 32], strides = [1, 1, 1]} : vector<4x16x32xf32> to vector<1x16x32xf32>
    %39 = vector.extract_strided_slice %36 {offsets = [2, 0, 0], sizes = [1, 16, 32], strides = [1, 1, 1]} : vector<4x16x32xf32> to vector<1x16x32xf32>
    %40 = vector.extract_strided_slice %36 {offsets = [3, 0, 0], sizes = [1, 16, 32], strides = [1, 1, 1]} : vector<4x16x32xf32> to vector<1x16x32xf32>
    %41 = tpu.concatenate %37, %38, %39, %40 in 2 : vector<1x16x32xf32>, vector<1x16x32xf32>, vector<1x16x32xf32>, vector<1x16x32xf32> -> vector<1x16x128xf32>
    %42 = vector.shape_cast %41 : vector<1x16x128xf32> to vector<16x128xf32>
    %c0_11 = arith.constant 0 : index
    %c0_12 = arith.constant 0 : index
    %43 = vector.load %arg4[%c0_11, %c0_12] : memref<128x128xf32, #tpu.memory_space<vmem>>, vector<128x128xf32>
    %cst_13 = arith.constant dense<0.000000e+00> : vector<16x128xf32>
    %44 = tpu.matmul %42, %43, %cst_13 {dimension_numbers = #tpu.dot_dimension_numbers<[1], [0], [0], [1], [0, 0, 1, 1], [], []>} : vector<16x128xf32>, vector<128x128xf32>, vector<16x128xf32> -> vector<16x128xf32>
    %c0_14 = arith.constant 0 : index
    %c0_15 = arith.constant 0 : index
    %45 = vector.load %arg5[%c0_14, %c0_15] : memref<1x128xf32, #tpu.memory_space<vmem>>, vector<1x128xf32>
    %46 = vector.broadcast %45 : vector<1x128xf32> to vector<16x128xf32>
    %47 = arith.addf %44, %46 : vector<16x128xf32>
    %48 = vector.shape_cast %47 : vector<16x128xf32> to vector<1x16x128xf32>
    %49 = vector.extract_strided_slice %48 {offsets = [0, 0, 0], sizes = [1, 8, 128], strides = [1, 1, 1]} : vector<1x16x128xf32> to vector<1x8x128xf32>
    %c0_16 = arith.constant 0 : index
    %c0_17 = arith.constant 0 : index
    %c0_18 = arith.constant 0 : index
    %50 = vector.load %arg6[%c0_16, %c0_17, %c0_18] : memref<1x8x128xf32, #tpu.memory_space<vmem>>, vector<1x8x128xf32>
    tpu.vector_store %arg6[%c0_16, %c0_17, %c0_18], %49 {strides = array<i32>} : memref<1x8x128xf32, #tpu.memory_space<vmem>>, vector<1x8x128xf32>,
    %51 = vector.extract_strided_slice %48 {offsets = [0, 8, 0], sizes = [1, 8, 128], strides = [1, 1, 1]} : vector<1x16x128xf32> to vector<1x8x128xf32>
    %c0_19 = arith.constant 0 : index
    %c0_20 = arith.constant 0 : index
    %c0_21 = arith.constant 0 : index
    %52 = vector.load %arg7[%c0_19, %c0_20, %c0_21] : memref<1x8x128xf32, #tpu.memory_space<vmem>>, vector<1x8x128xf32>
    tpu.vector_store %arg7[%c0_19, %c0_20, %c0_21], %51 {strides = array<i32>} : memref<1x8x128xf32, #tpu.memory_space<vmem>>, vector<1x8x128xf32>,
    return
  }
  func.func @transform_0(%arg0: i32) -> (i32, i32, i32) {
    %c0_i32 = arith.constant 0 : i32
    %c0_i32_0 = arith.constant 0 : i32
    %c0_i32_1 = arith.constant 0 : i32
    return %arg0, %c0_i32, %c0_i32_0 : i32, i32, i32
  }
  func.func @transform_1(%arg0: i32) -> (i32, i32) {
    %c0_i32 = arith.constant 0 : i32
    %c0_i32_0 = arith.constant 0 : i32
    %c0_i32_1 = arith.constant 0 : i32
    return %c0_i32, %c0_i32_0 : i32, i32
  }
  func.func @transform_2(%arg0: i32) -> (i32, i32) {
    %c0_i32 = arith.constant 0 : i32
    %c0_i32_0 = arith.constant 0 : i32
    %c0_i32_1 = arith.constant 0 : i32
    return %c0_i32, %c0_i32_0 : i32, i32
  }
  func.func @transform_3(%arg0: i32) -> (i32, i32) {
    %c0_i32 = arith.constant 0 : i32
    %c0_i32_0 = arith.constant 0 : i32
    %c0_i32_1 = arith.constant 0 : i32
    return %c0_i32, %c0_i32_0 : i32, i32
  }
  func.func @transform_4(%arg0: i32) -> (i32, i32) {
    %c0_i32 = arith.constant 0 : i32
    %c0_i32_0 = arith.constant 0 : i32
    %c0_i32_1 = arith.constant 0 : i32
    return %c0_i32, %c0_i32_0 : i32, i32
  }
  func.func @transform_5(%arg0: i32) -> (i32, i32, i32) {
    %c0_i32 = arith.constant 0 : i32
    %c0_i32_0 = arith.constant 0 : i32
    %c0_i32_1 = arith.constant 0 : i32
    return %arg0, %c0_i32, %c0_i32_0 : i32, i32, i32
  }
  func.func @transform_6(%arg0: i32) -> (i32, i32, i32) {
    %c0_i32 = arith.constant 0 : i32
    %c0_i32_0 = arith.constant 0 : i32
    %c0_i32_1 = arith.constant 0 : i32
    return %arg0, %c0_i32, %c0_i32_0 : i32, i32, i32
  }
}

</mosaic_0001>

<bundles_post_ra>
// kernel: multi_src_attention.1
= control target key start
LH: loop header
LB: loop body
LE: loop exit
PB: predicated region body
PF: predicated region fallthrough
CT: control target
= control target key end

     0   :  { %12 = vsyncpa [#allocation3], 0  ;;  %s2944_s0 = inlined_call_operand.hbm [shape: f32[2,16,128], index: 0, kind: input, shape index: {}]   ;;  %s2945_s1 = inlined_call_operand.hbm [shape: f32[128,384], index: 1, kind: input, shape index: {}]   ;;  %s2946_s2 = inlined_call_operand.hbm [shape: f32[1,384], index: 2, kind: input, shape index: {}]   ;;  %s2947_s3 = inlined_call_operand.hbm [shape: f32[128,128], index: 3, kind: input, shape index: {}]   ;;  %s2948_s4 = inlined_call_operand.hbm [shape: f32[1,128], index: 4, kind: input, shape index: {}]   ;;  %s2949_s5 = inlined_call_operand.hbm [shape: f32[2,8,128], index: 5, kind: output, shape index: {0}]   ;;  %s2950_s6 = inlined_call_operand.hbm [shape: f32[2,8,128], index: 6, kind: output, shape index: {1}]  }
   0x1   :  { %14 = vsyncpa [#allocation3 + $0x1], 0 }
   0x2   :  { %15 = vsyncpa [#allocation6], 0 }
   0x3   :  { %16 = vsyncpa [#allocation9], 0 }
   0x4   :  { %17 = vsyncpa [#allocation4], 0 }
   0x5   :  { %19 = vsyncpa [#allocation4 + $0x1], 0 }
   0x6   :  { %20 = vsyncpa [#allocation13], 0 }
   0x7   :  { %22 = vsyncpa [#allocation13 + $0x1], 0  ;;  %s2531_s21 = smov 0   ;;  %s2533_s22 = smov 0  }
   0x8   :  { %s2535_s23 = smov 0   ;;  %s2537_s24 = smov 0  }
   0x9 LB: > { %s2552_s25 = sadd.s32 4294967295, %s2479_s24   ;;  %s1674_s26 = sadd.s32 4294967294, %s2479_s24   ;;  %s2479_s24 = sphi %s2537_s24, %s2975_s24   ;;  %s2475_s23 = sphi %s2535_s23, %s2974_s23   ;;  %s2471_s22 = sphi %s2533_s22, %s2973_s22   ;;  %s2467_s21 = sphi %s2531_s21, %s2972_s21  }
   0xa   : > { %p48_p0 = scmp.ne.s32.totalorder %s2471_s22, %s2467_s21  ;;  %p2951_p1 = scmp.eq.s32.totalorder %s2552_s25, 0 }
   0xb   : > { %p162_p3 = scmp.eq.s32.totalorder %s1674_s26, 1  ;;  %p1675_p5 = scmp.ge.s32.totalorder %s2479_s24, 1 }
   0xc   : > { %p2561_p4 = por %p2951_p1, %p48_p0  ;;  %p195_p7 = scmp.lt.s32.totalorder %s2479_s24, 3 }
   0xd   : > { %p2566_p6 = por %p162_p3, %p48_p0  ;;  %s2481_s30 = smov [#allocation5]  }
   0xe   : > { %s2954_s27 = scalar_select %p2561_p4, 1, 0 }
   0xf   : > { %s2955_s28 = scalar_select %p2566_p6, 1, 0 }
  0x10   : > { %p2571_p8 = pnand %p1675_p5, %p195_p7  ;;  %s207_s7 = sshll.u32 %s2481_s30, 4  ;;  %s2575_s7 = int_to_ptr.vmem [resolvable:$true] %s207_s7 }
  0x11   : > { %s2482_s9 = smov [#allocation8]   ;;  %s2231_s13 = scalar_lea.hbm %s2945_s1, 6144 }
  0x12   : > { %s2956_s29 = scalar_select %p2571_p8, 1, 0 }
  0x13   : > { %p2076_p9 = pneg %p2571_p8  ;;  %s231_s10 = sshll.u32 %s2482_s9, 4  ;;  %s2586_s10 = int_to_ptr.vmem [resolvable:$true] %s231_s10 }
  0x14   : > { %p2232_p12 = scmp.ne.s32.totalorder %s2945_s1, %s2231_s13  ;;  %p2238_p5 = scmp.lt.u32.totalorder %s2231_s13, %s2945_s1 }
  0x15   : > { %p2582_p11 = pnand %p2076_p9, %p2951_p1 }
  0x17   : > { %p2596_p13 = pneg %p2582_p11 }
  0x19   : > { %p2234_p0 = pnand %p2596_p13, %p2232_p12 }
  0x1b   : > { %p2235_p3 = pneg %p2234_p0 }
  0x1d   : > { %p2240_p7 = pnand %p2238_p5, %p2235_p3 }
  0x1f   : > { %2243 = shalt.err (!%p2240_p7)
}
  0x20   : > { %s2244_s19 = scalar_lea.vmem %s2575_s7, 6144  ;;  %p2252_p2 = scmp.lt.s32.totalorder %s2575_s7, %s2575_s7 }
  0x21   : > { %p2245_p9 = scmp.ne.s32.totalorder %s2575_s7, %s2244_s19  ;;  %p2253_p6 = scmp.lt.s32.totalorder %s2244_s19, %s2244_s19 }
  0x23   : > { %p2247_p10 = pnand %p2245_p9, %p2596_p13  ;;  %p2254_p12 = por %p2253_p6, %p2252_p2 }
  0x25   : > { %p2248_p1 = pneg %p2247_p10 }
  0x27   : > { %p2255_p0 = pnand %p2254_p12, %p2248_p1 }
  0x29   : > { %2258 = shalt.err (!%p2255_p0)
}
  0x2a   : > { %s2483_s20 = smov 384   ;;  %s2484_s26 = smov 24  }
  0x2b   : > { %2079 = dma.hbm_to_vmem [thread:$0]  (!%p2582_p11), %s2945_s1, 6144, %s2575_s7, [#allocation6], %s2483_s20, %s2483_s20, %s2484_s26  }
  0x2c   : > { %s2259_s13 = scalar_lea.hbm %s2947_s3, 2048 }
  0x2d   : > { %p2260_p2 = scmp.ne.s32.totalorder %s2947_s3, %s2259_s13  ;;  %p2266_p10 = scmp.lt.u32.totalorder %s2259_s13, %s2947_s3 }
  0x2f   : > { %p2262_p1 = pnand %p2260_p2, %p2596_p13 }
  0x31   : > { %p2263_p6 = pneg %p2262_p1 }
  0x33   : > { %p2268_p3 = pnand %p2266_p10, %p2263_p6 }
  0x35   : > { %2271 = shalt.err (!%p2268_p3)
}
  0x36   : > { %s2272_s7 = scalar_lea.vmem %s2586_s10, 2048  ;;  %p2280_p12 = scmp.lt.s32.totalorder %s2586_s10, %s2586_s10 }
  0x37   : > { %p2273_p5 = scmp.ne.s32.totalorder %s2586_s10, %s2272_s7  ;;  %p2281_p0 = scmp.lt.s32.totalorder %s2272_s7, %s2272_s7 }
  0x39   : > { %p2275_p7 = pnand %p2273_p5, %p2596_p13  ;;  %p2282_p2 = por %p2281_p0, %p2280_p12 }
  0x3b   : > { %p2276_p9 = pneg %p2275_p7 }
  0x3d   : > { %p2283_p1 = pnand %p2282_p2, %p2276_p9 }
  0x3f   : > { %2286 = shalt.err (!%p2283_p1)
}
  0x40   : > { %s2485_s19 = smov 128   ;;  %s2486_s20 = smov 8  }
  0x41   : > { %2085 = dma.hbm_to_vmem [thread:$0]  (!%p2582_p11), %s2947_s3, 2048, %s2586_s10, [#allocation9], %s2485_s19, %s2485_s19, %s2486_s20  }
  0x42   : > { %s2487_s9 = smov [#allocation7]   ;;  %s2488_s12 = smov [#allocation10]  }
  0x43   : > { %s221_s11 = sshll.u32 %s2487_s9, 4  ;;  %s245_s13 = sshll.u32 %s2488_s12, 4  ;;  %s222_s11 = int_to_ptr.vmem [resolvable:$true] %s221_s11  ;;  %s2643_s13 = int_to_ptr.vmem [resolvable:$true] %s245_s13 }
  0x44   : > { %s2287_s17 = scalar_lea.hbm %s2946_s2, 48 }
  0x45   : > { %p2288_p6 = scmp.ne.s32.totalorder %s2946_s2, %s2287_s17  ;;  %p2294_p5 = scmp.lt.u32.totalorder %s2287_s17, %s2946_s2 }
  0x47   : > { %p2290_p10 = pnand %p2288_p6, %p2596_p13 }
  0x49   : > { %p2291_p3 = pneg %p2290_p10 }
  0x4b   : > { %p2296_p7 = pnand %p2294_p5, %p2291_p3 }
  0x4d   : > { %2299 = shalt.err (!%p2296_p7)
}
  0x4e   : > { %s2300_s30 = scalar_lea.vmem %s222_s11, 48  ;;  %s2307_s9 = scalar_lea.vmem %s222_s11, 64 }
  0x4f   : > { %p2301_p9 = scmp.ne.s32.totalorder %s222_s11, %s2300_s30  ;;  %p2308_p2 = scmp.lt.s32.totalorder %s222_s11, %s222_s11 }
  0x50   : > { %p2309_p1 = scmp.lt.s32.totalorder %s2307_s9, %s2300_s30 }
  0x51   : > { %p2303_p12 = pnand %p2301_p9, %p2596_p13 }
  0x52   : > { %p2310_p4 = por %p2309_p1, %p2308_p2 }
  0x53   : > { %p2304_p0 = pneg %p2303_p12 }
  0x55   : > { %p2311_p8 = pnand %p2310_p4, %p2304_p0 }
  0x57   : > { %2314 = shalt.err (!%p2311_p8)
}
  0x58   : > { %2082 = dma.hbm_to_vmem [thread:$0]  (!%p2582_p11), %s2946_s2, 48, %s222_s11, [#allocation6]  }
  0x59   : > { %s2315_s18 = scalar_lea.hbm %s2948_s4, 16 }
  0x5a   : > { %p2316_p6 = scmp.ne.s32.totalorder %s2948_s4, %s2315_s18  ;;  %p2322_p4 = scmp.lt.u32.totalorder %s2315_s18, %s2948_s4 }
  0x5c   : > { %p2318_p10 = pnand %p2316_p6, %p2596_p13 }
  0x5e   : > { %p2319_p3 = pneg %p2318_p10 }
  0x60   : > { %p2324_p8 = pnand %p2322_p4, %p2319_p3 }
  0x62   : > { %2327 = shalt.err (!%p2324_p8)
}
  0x63   : > { %s2328_s11 = scalar_lea.vmem %s2643_s13, 16  ;;  %s2335_s9 = scalar_lea.vmem %s2643_s13, 32 }
  0x64   : > { %p2329_p5 = scmp.ne.s32.totalorder %s2643_s13, %s2328_s11  ;;  %p2336_p12 = scmp.lt.s32.totalorder %s2643_s13, %s2643_s13 }
  0x65   : > { %p2337_p0 = scmp.lt.s32.totalorder %s2335_s9, %s2328_s11 }
  0x66   : > { %p2331_p7 = pnand %p2329_p5, %p2596_p13 }
  0x67   : > { %p2338_p2 = por %p2337_p0, %p2336_p12 }
  0x68   : > { %p2332_p9 = pneg %p2331_p7 }
  0x6a   : > { %p2339_p1 = pnand %p2338_p2, %p2332_p9 }
  0x6c   : > { %2342 = shalt.err (!%p2339_p1)
}
  0x6d   : > { %2088 = dma.hbm_to_vmem [thread:$0]  (!%p2582_p11), %s2948_s4, 16, %s2643_s13, [#allocation9]  }
  0x6e   : > { %s2688_s16 = sadd.s32 1, %s2479_s24   ;;  %s35_s15 = sadd.s32 1, %s2475_s23 }
  0x6f   : > { %s32_s8 = ssub.s32 %s2479_s24, %s2688_s16  ;;  %p42_p6 = scmp.ne.s32.totalorder %s2475_s23, %s2471_s22 }
  0x70   : > { %p33_p13 = scmp.eq.s32.totalorder %s32_s8, 0  ;;  %p43_p10 = scmp.eq.s32.totalorder %s2479_s24, 0 }
  0x71   : > { %p2959_p4 = scmp.eq.s32.totalorder %s2552_s25, 1  ;;  %p2104_p5 = scmp.lt.s32.totalorder %s2479_s24, 2 }
  0x72   : > { %s2697_s17 = scalar_select %p33_p13, %s2475_s23, %s35_s15  }
  0x73   : > { %p44_p3 = por %p43_p10, %p42_p6  ;;  %p2701_p8 = por %p2959_p4, %p42_p6 }
  0x74   : > { %s256_s7 = sand.u32 1, %s2475_s23   ;;  %s1723_s13 = sshll.u32 %s2479_s24, 8 }
  0x75   : > { %s1681_s26 = sshll.u32 %s256_s7, 4  ;;  %s2711_s11 = scalar_lea.hbm %s2944_s0, %s1723_s13 }
  0x76   : > { %s260_s9 = scalar_lea.vmem [#allocation2], %s1681_s26  ;;  %p2715_p11 = pnand %p2104_p5, %p44_p3 }
  0x77   : > { %s267_s12 = sshll.u32 %s260_s9, 4  ;;  %s2719_s8 = scalar_lea.sflag [#allocation3], %s256_s7  ;;  %s2713_s12 = int_to_ptr.vmem [resolvable:$true] %s267_s12 }
  0x78   : > { %s2343_s15 = scalar_lea.hbm %s2711_s11, 256  ;;  %p2345_p9 = pneg %p2715_p11 }
  0x79   : > { %p2344_p7 = scmp.ne.s32.totalorder %s2711_s11, %s2343_s15  ;;  %s2348_s10 = scalar_lea.hbm %s2944_s0, 512 }
  0x7a   : > { %p2349_p2 = scmp.lt.u32.totalorder %s2711_s11, %s2944_s0  ;;  %p2350_p1 = scmp.lt.u32.totalorder %s2348_s10, %s2343_s15 }
  0x7b   : > { %p2346_p12 = pnand %p2345_p9, %p2344_p7  ;;  %p2352_p6 = scmp.lt.u32.totalorder %s2343_s15, %s2711_s11 }
  0x7c   : > { %p2351_p13 = por %p2350_p1, %p2349_p2 }
  0x7d   : > { %p2347_p0 = pneg %p2346_p12 }
  0x7e   : > { %p2353_p10 = por %p2352_p6, %p2351_p13 }
  0x80   : > { %p2354_p3 = pnand %p2353_p10, %p2347_p0 }
  0x82   : > { %2357 = shalt.err (!%p2354_p3)
}
  0x83   : > { %s2358_s7 = scalar_lea.vmem %s2713_s12, 256  ;;  %s2489_s26 = smov [#allocation2]  }
  0x84   : > { %p2359_p4 = scmp.ne.s32.totalorder %s2713_s12, %s2358_s7  ;;  %s2363_s13 = sshll.u32 %s2489_s26, 4  ;;  %s2364_s13 = int_to_ptr.vmem [resolvable:$false] %s2363_s13 }
  0x85   : > { %s2365_s30 = scalar_lea.vmem %s2364_s13, 512  ;;  %p2366_p12 = scmp.lt.s32.totalorder %s2713_s12, %s2364_s13 }
  0x86   : > { %p2361_p5 = pnand %p2359_p4, %p2345_p9  ;;  %p2367_p2 = scmp.lt.s32.totalorder %s2365_s30, %s2358_s7 }
  0x88   : > { %p2362_p7 = pneg %p2361_p5  ;;  %p2368_p1 = por %p2367_p2, %p2366_p12 }
  0x8a   : > { %p2369_p13 = pnand %p2368_p1, %p2362_p7 }
  0x8c   : > { %2372 = shalt.err (!%p2369_p13)
}
  0x8d   : > { %2092 = dma.hbm_to_vmem [thread:$0]  (!%p2715_p11), %s2711_s11, 256, %s2713_s12, %s2719_s8, %s2485_s19, %s2485_s19, %s2486_s20  }
  0x8e   : > { %p2962_p9 = scmp.ne.s32.totalorder %s2956_s29, 0 }
  0x8f   : > { %s2753_s15 = sand.u32 (!%p2962_p9), 1, %s2471_s22   ;;  %p2963_p0 = scmp.ne.s32.totalorder (!%p2962_p9), %s2954_s27, 0 }
  0x90   : > { %279 = sbr.rel (%p2962_p9) target bundleno = 1674 (0x68a), region = 40  ;;  %s1685_s10 = sshll.u32 (!%p2962_p9), %s2753_s15, 4 }
  0x91   : > { %s282_s9 = scalar_lea.sflag (!%p2962_p9), [#allocation3], %s2753_s15  ;;  %s2757_s7 = scalar_lea.vmem (!%p2962_p9), [#allocation2], %s1685_s10 }
  0x97   : > { %2446 = dma.done.wait (%p2963_p0), %s282_s9, 256  }
  0x98   : > { %2448 = vsyncadd (%p2963_p0), %s282_s9, 4294967040  ;;  %p2964_p11 = scmp.eq.s32.totalorder %s2552_s25, 0 }
  0x9a   : > { %2450 = dma.done.wait (%p2964_p11), [#allocation6], 6192   ;;  %p2965_p6 = pmov %p2964_p11 }
  0x9c   : > { %2452 = vsyncadd (%p2965_p6), [#allocation6], 4294961104  ;;  %p2966_p10 = pmov %p2965_p6 }
  0x9d   : > { %p2967_p3 = pmov %p2965_p6 }
  0x9e   : > { %2454 = dma.done.wait (%p2966_p10), [#allocation9], 2064  }
  0x9f   : > { %2456 = vsyncadd (%p2967_p3), [#allocation9], 4294965232  ;;  %v2490_v0 = vmov 0.0   ;;  %v338_v1 = vld [vmem:[#allocation5 + $0x8] sm:$0xff]  ;;  %v341_v2 = vld [vmem:[#allocation5 + $0x20] sm:$0xff]  ;;  %vm616_vm0 = vcmask 261120  }
  0xa0   : > { %466 = vmatprep.mubr.f32.mxu0 %v2490_v0  ;;  %v337_v3 = vld [vmem:[#allocation5] sm:$0xff]  ;;  %v1918_v4 = vpack.c.bf16 %v341_v2, %v338_v1  ;;  %v340_v5 = vld [vmem:[#allocation5 + $0x18] sm:$0xff]  ;;  %v347_v7 = vld [vmem:[#allocation5 + $0x50] sm:$0xff]  ;;  %s2491_s27 = smov 64   ;;  %s2492_s29 = smov 96   ;;  %vm957_vm2 = vcmask 130048  }
  0xa1   : > { %v344_v6 = vld [vmem:[#allocation5 + $0x38] sm:$0xff]  ;;  %v1920_v8 = vpack.c.bf16 %v340_v5, %v337_v3  ;;  %v343_v10 = vld [vmem:[#allocation5 + $0x30] sm:$0xff]  ;;  %v346_v11 = vld [vmem:[#allocation5 + $0x48] sm:$0xff]  ;;  %s2493_s19 = smov 32   ;;  %vm1396_vm3 = vcmask 523264   ;;  %vm1399_vm4 = vcmask 785408  }
  0xa2   : > { %v1922_v9 = vpack.c.bf16 %v347_v7, %v344_v6  ;;  %v350_v12 = vld [vmem:[#allocation5 + $0x68] sm:$0xff]  ;;  %1919 = vmatprep.subr.bf16.mxu0 %v1918_v4  ;;  %v353_v13 = vld [vmem:[#allocation5 + $0x80] sm:$0xff]  ;;  %v1924_v14 = vpack.c.bf16 %v346_v11, %v343_v10  ;;  %v352_v17 = vld [vmem:[#allocation5 + $0x78] sm:$0xff]  ;;  %s1690_s20 = sshll.u32 %s2753_s15, 3  ;;  %s1719_s11 = sshll.u32 %s2552_s25, 7 }
  0xa3   : > { %1921 = vmatpush1.bf16.msra.mxu0 %v1920_v8  ;;  %v1926_v15 = vpack.c.bf16 %v353_v13, %v350_v12  ;;  %v349_v16 = vld [vmem:[#allocation5 + $0x60] sm:$0xff]  ;;  %v356_v18 = vld [vmem:[#allocation5 + $0x98] sm:$0xff]  ;;  %v359_v19 = vld [vmem:[#allocation5 + $0xb0] sm:$0xff]  ;;  %v387_v12 = vlaneseq  ;;  %s334_s12 = scalar_lea.vmem [#allocation12], %s1690_s20  ;;  %s327_s8 = scalar_lea.vmem [#allocation11], %s1690_s20 }
  0xa4   : > { %1923 = vmatprep.subr.bf16.mxu0 %v1922_v9  ;;  %v1928_v20 = vpack.c.bf16 %v352_v17, %v349_v16  ;;  %v1930_v21 = vpack.c.bf16 %v359_v19, %v356_v18  ;;  %v355_v22 = vld [vmem:[#allocation5 + $0x90] sm:$0xff]  ;;  %v358_v23 = vld [vmem:[#allocation5 + $0xa8] sm:$0xff]  ;;  %v365_v25 = vld [vmem:[#allocation5 + $0xe0] sm:$0xff]  ;;  %s1534_s14 = sshll.u32 %s334_s12, 4  ;;  %s1521_s26 = sshll.u32 %s327_s8, 4  ;;  %s2873_s14 = int_to_ptr.vmem [resolvable:$true] %s1534_s14  ;;  %s2880_s26 = int_to_ptr.vmem [resolvable:$true] %s1521_s26 }
  0xa5   : > { %v362_v24 = vld [vmem:[#allocation5 + $0xc8] sm:$0xff]  ;;  %v2773_v26 = vld [vmem:[%s2757_s7] sm:$0xff]  ;;  %v1932_v29 = vpack.c.bf16 %v358_v23, %v355_v22  ;;  %v348_v33 = vld [vmem:[#allocation5 + $0x58] sm:$0xff]  ;;  %v388_v13 = vshrl.u32 %v387_v12, 7  ;;  %s2871_s10 = scalar_lea.hbm %s2950_s6, %s1719_s11 }
  0xa6   : > { %v339_v27 = vld [vmem:[#allocation5 + $0x10] sm:$0xff]  ;;  %v342_v28 = vld [vmem:[#allocation5 + $0x28] sm:$0xff]  ;;  %1824 = vmatprep.mubr.f32.mxu1 %v2773_v26  ;;  %v361_v30 = vld [vmem:[#allocation5 + $0xc0] sm:$0xff]  ;;  %v1934_v34 = vpack.c.bf16 %v365_v25, %v362_v24 }
  0xa7   : > { %1925 = vmatpush1.bf16.msra.mxu0 %v1924_v14  ;;  %v1950_v31 = vpack.c.bf16 %v342_v28, %v339_v27  ;;  %v345_v32 = vld [vmem:[#allocation5 + $0x40] sm:$0xff]  ;;  %v364_v35 = vld [vmem:[#allocation5 + $0xd8] sm:$0xff]  ;;  %v351_v37 = vld [vmem:[#allocation5 + $0x70] sm:$0xff]  ;;  %v389_v14 = vsub.s32 0, %v388_v13  ;;  %v393_v17 = vsub.s32 1, %v388_v13 }
  0xa8   : > { %1927 = vmatprep.subr.bf16.mxu0 %v1926_v15  ;;  %v1954_v36 = vpack.c.bf16 %v348_v33, %v345_v32  ;;  %v354_v38 = vld [vmem:[#allocation5 + $0x88] sm:$0xff]  ;;  %v368_v39 = vld [vmem:[#allocation5 + $0xf8] sm:$0xff]  ;;  %v371_v40 = vld [vmem:[#allocation5 + $0x110] sm:$0xff]  ;;  %v1936_v41 = vpack.c.bf16 %v364_v35, %v361_v30  ;;  %v397_v33 = vsub.s32 2, %v388_v13 }
  0xa9   : > { %1951 = vmatprep.subr.bf16.mxu1 %v1950_v31  ;;  %v367_v42 = vld [vmem:[#allocation5 + $0xf0] sm:$0xff]  ;;  %v1958_v43 = vpack.c.bf16 %v354_v38, %v351_v37  ;;  %v1938_v44 = vpack.c.bf16 %v371_v40, %v368_v39  ;;  %v370_v45 = vld [vmem:[#allocation5 + $0x108] sm:$0xff]  ;;  %v357_v46 = vld [vmem:[#allocation5 + $0xa0] sm:$0xff] }
  0xaa   : > { %1953 = vmatpush3.bf16.msra.mxu1 %v1950_v31  ;;  %v360_v47 = vld [vmem:[#allocation5 + $0xb8] sm:$0xff]  ;;  %v374_v48 = vld [vmem:[#allocation5 + $0x128] sm:$0xff]  ;;  %v377_v49 = vld [vmem:[#allocation5 + $0x140] sm:$0xff]  ;;  %v1940_v50 = vpack.c.bf16 %v370_v45, %v367_v42 }
  0xab   : > { %1929 = vmatpush1.bf16.msra.mxu0 %v1928_v20  ;;  %1955 = vmatprep.subr.bf16.mxu1 %v1954_v36  ;;  %v373_v51 = vld [vmem:[#allocation5 + $0x120] sm:$0xff]  ;;  %v1962_v52 = vpack.c.bf16 %v360_v47, %v357_v46  ;;  %v1942_v53 = vpack.c.bf16 %v377_v49, %v374_v48  ;;  %v376_v54 = vld [vmem:[#allocation5 + $0x138] sm:$0xff]  ;;  %v363_v55 = vld [vmem:[#allocation5 + $0xd0] sm:$0xff] }
  0xac   : > { %1931 = vmatprep.subr.bf16.mxu0 %v1930_v21  ;;  %v366_v56 = vld [vmem:[#allocation5 + $0xe8] sm:$0xff]  ;;  %v380_v57 = vld [vmem:[#allocation5 + $0x158] sm:$0xff]  ;;  %v383_v58 = vld [vmem:[#allocation5 + $0x170] sm:$0xff]  ;;  %v1944_v59 = vpack.c.bf16 %v376_v54, %v373_v51 }
  0xad   : > { %v379_v60 = vld [vmem:[#allocation5 + $0x150] sm:$0xff]  ;;  %v1966_v61 = vpack.c.bf16 %v366_v56, %v363_v55  ;;  %v1946_v62 = vpack.c.bf16 %v383_v58, %v380_v57  ;;  %v382_v63 = vld [vmem:[#allocation5 + $0x168] sm:$0xff]  ;;  %v369_v1 = vld [vmem:[#allocation5 + $0x100] sm:$0xff] }
  0xae   : > { %1957 = vmatpush3.bf16.msra.mxu1 %v1954_v36  ;;  %v372_v2 = vld [vmem:[#allocation5 + $0x118] sm:$0xff]  ;;  %v1948_v3 = vpack.c.bf16 %v382_v63, %v379_v60  ;;  %v375_v5 = vld [vmem:[#allocation5 + $0x130] sm:$0xff]  ;;  %v378_v6 = vld [vmem:[#allocation5 + $0x148] sm:$0xff] }
  0xaf   : > { %1933 = vmatpush1.bf16.msra.mxu0 %v1932_v29  ;;  %1959 = vmatprep.subr.bf16.mxu1 %v1958_v43  ;;  %v1970_v4 = vpack.c.bf16 %v372_v2, %v369_v1  ;;  %v1974_v7 = vpack.c.bf16 %v378_v6, %v375_v5  ;;  %v336_v8 = vld [vmem:[%s2757_s7 + $0x8] sm:$0xff]  ;;  %v381_v9 = vld [vmem:[#allocation5 + $0x160] sm:$0xff]  ;;  %vm2782_vm1 = vmpackc.low %vm616_vm0, %vm616_vm0  ;;  %s2878_s7 = scalar_lea.hbm %s2949_s5, %s1719_s11 }
  0xb0   : > { %1935 = vmatprep.subr.bf16.mxu0 %v1934_v34  ;;  %v384_v10 = vld [vmem:[#allocation5 + $0x178] sm:$0xff]  ;;  %v385_v15 = vld [vmem:[#allocation7] sm:$0x7] }
  0xb1   : > { %v1978_v11 = vpack.c.bf16 %v384_v10, %v381_v9  ;;  %v390_v16 = vrot.slane %v385_v15, %v389_v14  ;;  %v398_v34 = vrot.slane %v385_v15, %v397_v33 }
  0xb2   : > { %1961 = vmatpush3.bf16.msra.mxu1 %v1958_v43 }
  0xb3   : > { %1937 = vmatpush1.bf16.msra.mxu0 %v1936_v41  ;;  %1963 = vmatprep.subr.bf16.mxu1 %v1962_v52 }
  0xb4   : > { %1939 = vmatprep.subr.bf16.mxu0 %v1938_v44 }
  0xb6   : > { %1965 = vmatpush3.bf16.msra.mxu1 %v1962_v52 }
  0xb7   : > { %1941 = vmatpush1.bf16.msra.mxu0 %v1940_v50  ;;  %1967 = vmatprep.subr.bf16.mxu1 %v1966_v61 }
  0xb8   : > { %1943 = vmatprep.subr.bf16.mxu0 %v1942_v53 }
  0xba   : > { %1969 = vmatpush3.bf16.msra.mxu1 %v1966_v61 }
  0xbb   : > { %1945 = vmatpush1.bf16.msra.mxu0 %v1944_v59  ;;  %1971 = vmatprep.subr.bf16.mxu1 %v1970_v4 }
  0xbc   : > { %1947 = vmatprep.subr.bf16.mxu0 %v1946_v62 }
  0xbe   : > { %1973 = vmatpush3.bf16.msra.mxu1 %v1970_v4 }
  0xbf   : > { %1949 = vmatpush1.bf16.msra.mxu0 %v1948_v3  ;;  %1975 = vmatprep.subr.bf16.mxu1 %v1974_v7 }
  0xc2   : > { %467 = vmatmul.mubr.f32.vlgmr.msra.gmra.mrb[0].mxu0 %v2773_v26  ;;  %1977 = vmatpush3.bf16.msra.mxu1 %v1974_v7 }
  0xc3   : > { %472 = vmatprep.mubr.f32.mxu0 %v2490_v0  ;;  %1979 = vmatprep.subr.bf16.mxu1 %v1978_v11  ;;  %v394_v0 = vrot.slane %v385_v15, %v393_v17 }
  0xc6   : > { %473 = vmatmul.mubr.f32.gmra.mrb[2].mxu0 %v336_v8  ;;  %1981 = vmatpush3.bf16.msra.mxu1 %v1978_v11 }
  0xc9   : > { %1825 = vmatmul.mubr.f32.vlgmr.msra.gmra.mrb[0].mxu1 %v336_v8 }
 0x195   : > { %v468_v18 = vpop.f32.mrb[0].mxu0 }
 0x196   : > { %v469_v19 = vadd.f32 %v468_v18, %v390_v16  ;;  %v470_v20 = vpop.f32.mrb[1].mxu0 }
 0x197   : > { %v471_v24 = vadd.f32 %v470_v20, %v394_v0 }
 0x198   : > { %v574_v21 = vmul.f32 0.17677669, %v469_v19 }
 0x199   : > { %v474_v22 = vpop.f32.mrb[2].mxu0 }
 0x19a   : > { %v476_v23 = vpop.f32.mrb[3].mxu0  ;;  %1831 = vmatprep.mubr.msk.f32.mxu1 %vm616_vm0, %v574_v21  ;;  %v475_v29 = vadd.f32 %v474_v22, %v390_v16 }
 0x19b   : > { %v477_v25 = vadd.f32 %v476_v23, %v394_v0 }
 0x19c   : > { %v575_v30 = vmul.f32 0.17677669, %v475_v29  ;;  %v1826_v31 = vpop.f32.mrb[0].mxu1 }
 0x19d   : > { %v2159_v26 = vpack.i.bf16 %v477_v25, %v471_v24  ;;  %v1982_v27 = vpack.c.bf16 %v477_v25, %v471_v24  ;;  %v545_v32 = vpop.f32.mrb[1].mxu1  ;;  %v2800_v35 = vadd.f32 %v1826_v31, %v398_v34 }
 0x19e   : > { %v2802_v36 = vadd.f32 %v545_v32, %v398_v34 }
 0x19f   : > { %2160 = vrot.lane.b32.xlu1 %v2159_v26, %s2491_s27  ;;  %2155 = vrot.lane.b32.xlu0 %v2159_v26, %s2492_s29 }
 0x1a0   : > { %1984 = vmatprep.subr.msk.bf16.mxu1 %vm2782_vm1, %v1982_v27  ;;  %v2006_v37 = vpack.c.bf16 %v2800_v35, %v2802_v36 }
 0x1a1   : > { %1987 = vmatpush3.bf16.xpose.msk.msra.mxu1 %vm2782_vm1, %v1982_v27 }
 0x1a2   : > { %2007 = vmatprep.subr.bf16.mxu0 %v2006_v37 }
 0x1a3   : > { %558 = vrot.lane.b32.xlu1 %v475_v29, %s2492_s29  ;;  %556 = vrot.lane.b32.xlu0 %v469_v19, %s2492_s29 }
 0x1a4   : > { %2009 = vmatpush3.bf16.msra.mxu0 %v2006_v37 }
 0x1a7   : > { %2165 = vrot.lane.b32.xlu1 %v2159_v26, %s2493_s19  ;;  %562 = vrot.lane.b32.xlu0 %v469_v19, %s2491_s27 }
 0x1a8   : > { %1832 = vmatmul.mubr.msk.f32.vlgmr.msra.gmra.mrb[2].mxu1 %vm616_vm0, %v575_v30 }
 0x1ab   : > { %568 = vrot.lane.b32.xlu1 %v469_v19, %s2493_s19  ;;  %564 = vrot.lane.b32.xlu0 %v475_v29, %s2491_s27 }
 0x1af   : > { %570 = vrot.lane.b32.xlu0 %v475_v29, %s2493_s19 }
 0x211   : > { %v2161_v38 = vpop.permute.xlu1 %2160  ;;  %v2156_v39 = vpop.permute.xlu0 %2155 }
 0x212   : > { %v2163_v40 = vunpack.i.h.bf16 %v2161_v38  ;;  %v2162_v41 = vunpack.i.l.bf16 %v2161_v38  ;;  %v2158_v42 = vunpack.i.h.bf16 %v2156_v39  ;;  %v2157_v43 = vunpack.i.l.bf16 %v2156_v39 }
 0x214   : > { %v1988_v44 = vpack.c.bf16 %v2158_v42, %v2157_v43  ;;  %v1994_v47 = vpack.c.bf16 %v2163_v40, %v2162_v41 }
 0x215   : > { %v559_v45 = vpop.permute.xlu1 %558  ;;  %v557_v46 = vpop.permute.xlu0 %556 }
 0x216   : > { %v576_v48 = vmul.f32 0.17677669, %v557_v46  ;;  %1990 = vmatprep.subr.msk.bf16.mxu1 %vm2782_vm1, %v1988_v44  ;;  %v577_v53 = vmul.f32 0.17677669, %v559_v45 }
 0x217   : > { %1993 = vmatpush3.bf16.xpose.msk.msra.mxu1 %vm2782_vm1, %v1988_v44 }
 0x218   : > { %1838 = vmatprep.mubr.msk.f32.mxu1 %vm616_vm0, %v576_v48  ;;  %1996 = vmatprep.subr.msk.bf16.mxu1 %vm2782_vm1, %v1994_v47 }
 0x219   : > { %v2166_v49 = vpop.permute.xlu1 %2165  ;;  %v563_v52 = vpop.permute.xlu0 %562 }
 0x21a   : > { %v2168_v50 = vunpack.i.h.bf16 %v2166_v49  ;;  %v2167_v51 = vunpack.i.l.bf16 %v2166_v49  ;;  %v578_v54 = vmul.f32 0.17677669, %v563_v52 }
 0x21c   : > { %v2000_v55 = vpack.c.bf16 %v2168_v50, %v2167_v51 }
 0x21d   : > { %v565_v56 = vpop.permute.xlu0 %564  ;;  %v569_v57 = vpop.permute.xlu1 %568 }
 0x21e   : > { %1839 = vmatmul.mubr.msk.f32.vlgmr.msra.gmra.mrb[4].mxu1 %vm616_vm0, %v577_v53  ;;  %v579_v58 = vmul.f32 0.17677669, %v565_v56  ;;  %v580_v59 = vmul.f32 0.17677669, %v569_v57 }
 0x21f   : > { %1999 = vmatpush3.bf16.xpose.msk.msra.mxu1 %vm2782_vm1, %v1994_v47  ;;  %1845 = vmatprep.mubr.msk.f32.mxu1 %vm616_vm0, %v578_v54 }
 0x220   : > { %2002 = vmatprep.subr.msk.bf16.mxu1 %vm2782_vm1, %v2000_v55 }
 0x221   : > { %v571_v60 = vpop.permute.xlu0 %570 }
 0x222   : > { %v581_v61 = vmul.f32 0.17677669, %v571_v60 }
 0x226   : > { %1846 = vmatmul.mubr.msk.f32.vlgmr.msra.gmra.mrb[6].mxu1 %vm616_vm0, %v579_v58  ;;  %v2174_v58 = vpack.i.bf16 %v2800_v35, %v2802_v36 }
 0x227   : > { %2005 = vmatpush3.bf16.xpose.msk.msra.mxu1 %vm2782_vm1, %v2000_v55  ;;  %1852 = vmatprep.mubr.msk.f32.mxu1 %vm616_vm0, %v580_v59 }
 0x22e   : > { %1853 = vmatmul.mubr.msk.f32.vlgmr.msra.gmra.mrb[8].mxu1 %vm616_vm0, %v581_v61 }
 0x27b   : > { %v1833_v62 = vpop.f32.mrb[2].mxu1 }
 0x27c   : > { %v693_v63 = vpop.f32.mrb[3].mxu1  ;;  %v961_v1 = vsel %vm957_vm2, %v1833_v62, -inf }
 0x27d   : > { %962 = vmax.xlane.f32.xlu0 %v961_v1  ;;  %v958_v2 = vsel %vm957_vm2, %v693_v63, -inf }
 0x27e   : > { %959 = vmax.xlane.f32.xlu1 %v958_v2 }
 0x2f1   : > { %v1840_v3 = vpop.f32.mrb[4].mxu1 }
 0x2f2   : > { %v778_v4 = vpop.f32.mrb[5].mxu1  ;;  %v967_v5 = vsel %vm957_vm2, %v1840_v3, -inf }
 0x2f3   : > { %968 = vmax.xlane.f32.xlu1 %v967_v5  ;;  %v964_v6 = vsel %vm957_vm2, %v778_v4, -inf }
 0x2f4   : > { %965 = vmax.xlane.f32.xlu0 %v964_v6 }
 0x2f9   : > { %v1847_v7 = vpop.f32.mrb[6].mxu1 }
 0x2fa   : > { %v863_v8 = vpop.f32.mrb[7].mxu1  ;;  %v973_v9 = vsel %vm957_vm2, %v1847_v7, -inf }
 0x2fb   : > { %974 = vmax.xlane.f32.xlu1 %v973_v9  ;;  %v970_v10 = vsel %vm957_vm2, %v863_v8, -inf }
 0x2fc   : > { %971 = vmax.xlane.f32.xlu0 %v970_v10 }
 0x301   : > { %v1854_v11 = vpop.f32.mrb[8].mxu1 }
 0x302   : > { %v948_v12 = vpop.f32.mrb[9].mxu1  ;;  %v979_v13 = vsel %vm957_vm2, %v1854_v11, -inf }
 0x303   : > { %980 = vmax.xlane.f32.xlu1 %v979_v13  ;;  %v976_v14 = vsel %vm957_vm2, %v948_v12, -inf }
 0x304   : > { %977 = vmax.xlane.f32.xlu0 %v976_v14 }
 0x30a   : > { %v963_v15 = vpop.xlane.xlu0 %962 }
 0x30b   : > { %v983_v16 = vsub.f32 %v1833_v62, %v963_v15  ;;  %v960_v17 = vpop.xlane.xlu1 %959 }
 0x30c   : > { %v982_v18 = vsub.f32 %v693_v63, %v960_v17 }
 0x30d   : > { %v992_v19 = vmul.f32 1.442695, %v983_v16 }
 0x30e   : > { %v990_v20 = vmul.f32 1.442695, %v982_v18 }
 0x30f   : > { %2199 = vpow2.f32 %v992_v19 }
 0x310   : > { %2201 = vpow2.f32 %v990_v20 }
 0x319   : > { %v2200_v0 = vpop.eup %2199 }
 0x31a   : > { %v2202_v21 = vpop.eup %2201  ;;  %v1009_v22 = vsel %vm957_vm2, %v2200_v0, 0.0 }
 0x31b   : > { %1010 = vadd.xlane.f32.xlu1 %v1009_v22  ;;  %v1006_v23 = vsel %vm957_vm2, %v2202_v21, 0.0 }
 0x31c   : > { %1007 = vadd.xlane.f32.xlu0 %v1006_v23 }
 0x380   : > { %v969_v24 = vpop.xlane.xlu1 %968 }
 0x381   : > { %v985_v25 = vsub.f32 %v1840_v3, %v969_v24  ;;  %v966_v26 = vpop.xlane.xlu0 %965 }
 0x382   : > { %v984_v27 = vsub.f32 %v778_v4, %v966_v26 }
 0x383   : > { %v996_v28 = vmul.f32 1.442695, %v985_v25 }
 0x384   : > { %v994_v29 = vmul.f32 1.442695, %v984_v27 }
 0x385   : > { %2203 = vpow2.f32 %v996_v28 }
 0x386   : > { %2205 = vpow2.f32 %v994_v29  ;;  %v1402_v29 = vld [vmem:[#allocation8] sm:$0xff] }
 0x388   : > { %v975_v30 = vpop.xlane.xlu1 %974 }
 0x389   : > { %v987_v31 = vsub.f32 %v1847_v7, %v975_v30  ;;  %v972_v32 = vpop.xlane.xlu0 %971  ;;  %v1403_v30 = vld [vmem:[#allocation8 + $0x8] sm:$0xff] }
 0x38a   : > { %v986_v33 = vsub.f32 %v863_v8, %v972_v32  ;;  %v2022_v32 = vpack.c.bf16 %v1403_v30, %v1402_v29 }
 0x38b   : > { %v1000_v34 = vmul.f32 1.442695, %v987_v31  ;;  %v1404_v31 = vld [vmem:[#allocation8 + $0x10] sm:$0xff] }
 0x38c   : > { %v998_v37 = vmul.f32 1.442695, %v986_v33  ;;  %v1405_v33 = vld [vmem:[#allocation8 + $0x18] sm:$0xff] }
 0x38d   : > { %2207 = vpow2.f32 %v1000_v34  ;;  %v2026_v34 = vpack.c.bf16 %v1405_v33, %v1404_v31 }
 0x38e   : > { %2209 = vpow2.f32 %v998_v37  ;;  %v1406_v37 = vld [vmem:[#allocation8 + $0x20] sm:$0xff] }
 0x38f   : > { %v2834_v38 = vpop.eup %2203 }
 0x390   : > { %v2206_v39 = vpop.eup %2205  ;;  %v981_v40 = vpop.xlane.xlu1 %980  ;;  %v1015_v41 = vsel %vm957_vm2, %v2834_v38, 0.0 }
 0x391   : > { %v989_v42 = vsub.f32 %v1854_v11, %v981_v40  ;;  %1016 = vadd.xlane.f32.xlu1 %v1015_v41  ;;  %v978_v43 = vpop.xlane.xlu0 %977  ;;  %v1012_v44 = vsel %vm957_vm2, %v2206_v39, 0.0  ;;  %v1408_v40 = vld [vmem:[#allocation8 + $0x30] sm:$0xff]  ;;  %v1409_v41 = vld [vmem:[#allocation8 + $0x38] sm:$0xff] }
 0x392   : > { %v988_v45 = vsub.f32 %v948_v12, %v978_v43  ;;  %1013 = vadd.xlane.f32.xlu0 %v1012_v44  ;;  %v1410_v43 = vld [vmem:[#allocation8 + $0x40] sm:$0xff]  ;;  %v1411_v44 = vld [vmem:[#allocation8 + $0x48] sm:$0xff] }
 0x393   : > { %v1004_v46 = vmul.f32 1.442695, %v989_v42  ;;  %v2034_v42 = vpack.c.bf16 %v1409_v41, %v1408_v40 }
 0x394   : > { %v1002_v47 = vmul.f32 1.442695, %v988_v45  ;;  %v2038_v45 = vpack.c.bf16 %v1411_v44, %v1410_v43 }
 0x395   : > { %2211 = vpow2.f32 %v1004_v46  ;;  %v1412_v46 = vld [vmem:[#allocation8 + $0x50] sm:$0xff] }
 0x396   : > { %2213 = vpow2.f32 %v1002_v47  ;;  %v1413_v47 = vld [vmem:[#allocation8 + $0x58] sm:$0xff] }
 0x397   : > { %v2208_v48 = vpop.eup %2207 }
 0x398   : > { %v2210_v49 = vpop.eup %2209  ;;  %v1021_v50 = vsel %vm957_vm2, %v2208_v48, 0.0 }
 0x399   : > { %1022 = vadd.xlane.f32.xlu1 %v1021_v50  ;;  %v1018_v51 = vsel %vm957_vm2, %v2210_v49, 0.0  ;;  %v1415_v50 = vld [vmem:[#allocation8 + $0x68] sm:$0xff] }
 0x39a   : > { %1019 = vadd.xlane.f32.xlu0 %v1018_v51 }
 0x39f   : > { %v2841_v52 = vpop.eup %2211 }
 0x3a0   : > { %v2214_v53 = vpop.eup %2213  ;;  %v1027_v54 = vsel %vm957_vm2, %v2841_v52, 0.0 }
 0x3a1   : > { %1028 = vadd.xlane.f32.xlu1 %v1027_v54  ;;  %v1024_v55 = vsel %vm957_vm2, %v2214_v53, 0.0 }
 0x3a2   : > { %1025 = vadd.xlane.f32.xlu0 %v1024_v55 }
 0x3a8   : > { %v1011_v56 = vpop.xlane.xlu1 %1010 }
 0x3a9   : > { %2215 = vrcp.f32 %v1011_v56  ;;  %v1008_v57 = vpop.xlane.xlu0 %1007 }
 0x3aa   : > { %2217 = vrcp.f32 %v1008_v57 }
 0x3b2   : > { %2175 = vrot.lane.b32.xlu1 %v2174_v58, %s2491_s27 }
 0x3b3   : > { %v2216_v59 = vpop.eup %2215 }
 0x3b4   : > { %v2218_v60 = vpop.eup %2217  ;;  %v1039_v62 = vmul.f32 %v2216_v59, %v2200_v0 }
 0x3b5   : > { %v1038_v61 = vmul.f32 %v2218_v60, %v2202_v21 }
 0x3b6   : > { %2180 = vrot.lane.b32.xlu1 %v2174_v58, %s2493_s19 }
 0x3b7   : > { %1859 = vmatprep.mubr.msk.f32.mxu0 %vm957_vm2, %v1038_v61 }
 0x3b8   : > { %1860 = vmatmul.mubr.msk.f32.vlgmr.msra.gmra.mrb[4].mxu0 %vm957_vm2, %v1039_v62  ;;  %2170 = vrot.lane.b32.xlu0 %v2174_v58, %s2492_s29 }
 0x41e   : > { %v1017_v1 = vpop.xlane.xlu1 %1016 }
 0x41f   : > { %v1014_v63 = vpop.xlane.xlu0 %1013 }
 0x420   : > { %2219 = vrcp.f32 %v1014_v63 }
 0x426   : > { %v1023_v35 = vpop.xlane.xlu1 %1022 }
 0x427   : > { %v1020_v2 = vpop.xlane.xlu0 %1019 }
 0x428   : > { %2221 = vrcp.f32 %v1020_v2 }
 0x429   : > { %2223 = vrcp.f32 %v1023_v35 }
 0x42a   : > { %v2220_v36 = vpop.eup %2219  ;;  %2225 = vrcp.f32 %v1017_v1 }
 0x42b   : > { %v1040_v3 = vmul.f32 %v2220_v36, %v2206_v39 }
 0x42d   : > { %1866 = vmatprep.mubr.msk.f32.mxu1 %vm957_vm2, %v1040_v3 }
 0x42e   : > { %v1029_v4 = vpop.xlane.xlu1 %1028 }
 0x42f   : > { %v1026_v5 = vpop.xlane.xlu0 %1025 }
 0x430   : > { %2227 = vrcp.f32 %v1026_v5 }
 0x431   : > { %2229 = vrcp.f32 %v1029_v4 }
 0x432   : > { %v2222_v6 = vpop.eup %2221  ;;  %v2176_v7 = vpop.permute.xlu1 %2175 }
 0x433   : > { %v2178_v8 = vunpack.i.h.bf16 %v2176_v7  ;;  %v2177_v9 = vunpack.i.l.bf16 %v2176_v7  ;;  %v2171_v10 = vpop.permute.xlu0 %2170  ;;  %v1042_v11 = vmul.f32 %v2222_v6, %v2210_v49  ;;  %v2224_v15 = vpop.eup %2223  ;;  %v1414_v49 = vld [vmem:[#allocation8 + $0x60] sm:$0xff] }
 0x434   : > { %v2173_v12 = vunpack.i.h.bf16 %v2171_v10  ;;  %v2172_v13 = vunpack.i.l.bf16 %v2171_v10  ;;  %v2226_v18 = vpop.eup %2225  ;;  %v1043_v0 = vmul.f32 %v2224_v15, %v2208_v48  ;;  %v2042_v48 = vpack.c.bf16 %v1413_v47, %v1412_v46 }
 0x435   : > { %v2014_v14 = vpack.c.bf16 %v2178_v8, %v2177_v9  ;;  %1873 = vmatprep.mubr.msk.f32.mxu0 %vm957_vm2, %v1042_v11  ;;  %v1041_v23 = vmul.f32 %v2226_v18, %v2834_v38  ;;  %v1407_v38 = vld [vmem:[#allocation8 + $0x28] sm:$0xff]  ;;  %v2046_v51 = vpack.c.bf16 %v1415_v50, %v1414_v49 }
 0x436   : > { %v2010_v16 = vpack.c.bf16 %v2173_v12, %v2172_v13  ;;  %v2181_v17 = vpop.permute.xlu1 %2180  ;;  %v2030_v39 = vpack.c.bf16 %v1407_v38, %v1406_v37 }
 0x437   : > { %v2183_v19 = vunpack.i.h.bf16 %v2181_v17  ;;  %v2182_v20 = vunpack.i.l.bf16 %v2181_v17  ;;  %2015 = vmatprep.subr.bf16.mxu0 %v2014_v14 }
 0x438   : > { %2011 = vmatprep.subr.bf16.mxu1 %v2010_v16  ;;  %2017 = vmatpush3.bf16.msra.mxu0 %v2014_v14  ;;  %v1716_v14 = vld [vmem:[#allocation10] ss:$0 sm:$0xff] }
 0x439   : > { %v2018_v21 = vpack.c.bf16 %v2183_v19, %v2182_v20  ;;  %2013 = vmatpush3.bf16.msra.mxu1 %v2010_v16  ;;  %2023 = vmatprep.subr.bf16.mxu0 %v2022_v32 }
 0x43a   : > { %v2228_v22 = vpop.eup %2227 }
 0x43b   : > { %v2230_v24 = vpop.eup %2229  ;;  %1874 = vmatmul.mubr.msk.f32.vlgmr.msra.gmra.mrb[6].mxu0 %vm957_vm2, %v1043_v0  ;;  %2019 = vmatprep.subr.bf16.mxu1 %v2018_v21  ;;  %v1044_v25 = vmul.f32 %v2228_v22, %v2214_v53  ;;  %v1417_v53 = vld [vmem:[#allocation8 + $0x78] sm:$0xff] }
 0x43c   : > { %1867 = vmatmul.mubr.msk.f32.vlgmr.msra.gmra.mrb[10].mxu1 %vm957_vm2, %v1041_v23  ;;  %v1045_v26 = vmul.f32 %v2230_v24, %v2841_v52  ;;  %2025 = vmatpush3.bf16.msra.mxu0 %v2022_v32  ;;  %v1416_v52 = vld [vmem:[#allocation8 + $0x70] sm:$0xff] }
 0x43d   : > { %2021 = vmatpush3.bf16.msra.mxu1 %v2018_v21  ;;  %1880 = vmatprep.mubr.msk.f32.mxu1 %vm957_vm2, %v1044_v25  ;;  %v2050_v54 = vpack.c.bf16 %v1417_v53, %v1416_v52 }
 0x43e   : > { %2027 = vmatprep.subr.bf16.mxu0 %v2026_v34 }
 0x440   : > { %1881 = vmatmul.mubr.msk.f32.vlgmr.msra.gmra.mrb[12].mxu1 %vm957_vm2, %v1045_v26  ;;  %2029 = vmatpush3.bf16.msra.mxu0 %v2026_v34 }
 0x441   : > { %2031 = vmatprep.subr.bf16.mxu0 %v2030_v39 }
 0x444   : > { %2033 = vmatpush3.bf16.msra.mxu0 %v2030_v39 }
 0x445   : > { %2035 = vmatprep.subr.bf16.mxu0 %v2034_v42 }
 0x448   : > { %2037 = vmatpush3.bf16.msra.mxu0 %v2034_v42 }
 0x449   : > { %2039 = vmatprep.subr.bf16.mxu0 %v2038_v45 }
 0x44c   : > { %2041 = vmatpush3.bf16.msra.mxu0 %v2038_v45 }
 0x44d   : > { %2043 = vmatprep.subr.bf16.mxu0 %v2042_v48 }
 0x450   : > { %2045 = vmatpush3.bf16.msra.mxu0 %v2042_v48 }
 0x451   : > { %2047 = vmatprep.subr.bf16.mxu0 %v2046_v51 }
 0x454   : > { %2049 = vmatpush3.bf16.msra.mxu0 %v2046_v51 }
 0x455   : > { %2051 = vmatprep.subr.bf16.mxu0 %v2050_v54 }
 0x458   : > { %2053 = vmatpush3.bf16.msra.mxu0 %v2050_v54 }
 0x48b   : > { %v1861_v27 = vpop.f32.mrb[4].mxu0 }
 0x48c   : > { %v1118_v28 = vpop.f32.mrb[5].mxu0 }
 0x50e   : > { %v1875_v55 = vpop.f32.mrb[6].mxu0 }
 0x50f   : > { %v1868_v56 = vpop.f32.mrb[10].mxu1  ;;  %v1280_v57 = vpop.f32.mrb[7].mxu0 }
 0x510   : > { %v2189_v58 = vpack.i.bf16 %v1875_v55, %v1280_v57  ;;  %v1199_v59 = vpop.f32.mrb[11].mxu1 }
 0x511   : > { %v2184_v60 = vpack.i.bf16 %v1868_v56, %v1199_v59 }
 0x512   : > { %2190 = vrot.lane.b32.xlu1 %v2189_v58, %s2491_s27  ;;  %s1508_s27 = scalar_lea.sflag [#allocation13], %s2753_s15 }
 0x513   : > { %2185 = vrot.lane.b32.xlu0 %v2184_v60, %s2493_s19  ;;  %v1882_v61 = vpop.f32.mrb[12].mxu1  ;;  %s2494_s19 = smov [#allocation12]  }
 0x514   : > { %v1361_v62 = vpop.f32.mrb[13].mxu1  ;;  %s2377_s20 = sshll.u32 %s2494_s19, 4  ;;  %s2378_s20 = int_to_ptr.vmem [resolvable:$false] %s2377_s20 }
 0x515   : > { %v2194_v63 = vpack.i.bf16 %v1882_v61, %v1361_v62  ;;  %s2379_s13 = scalar_lea.vmem %s2378_s20, 256  ;;  %p2380_p12 = scmp.lt.s32.totalorder %s2873_s14, %s2378_s20 }
 0x517   : > { %2195 = vrot.lane.b32.xlu0 %v2194_v63, %s2492_s29  ;;  %s2373_s29 = scalar_lea.vmem %s2873_s14, 128 }
 0x518   : > { %p2374_p4 = scmp.ne.s32.totalorder %s2873_s14, %s2373_s29  ;;  %p2381_p2 = scmp.lt.s32.totalorder %s2379_s13, %s2373_s29 }
 0x51a   : > { %p2375_p5 = pnand %p2374_p4, %p2701_p8  ;;  %p2382_p1 = por %p2381_p2, %p2380_p12 }
 0x51c   : > { %p2376_p7 = pneg %p2375_p5 }
 0x51e   : > { %p2383_p13 = pnand %p2382_p1, %p2376_p7 }
 0x584   : > { %v2191_v2 = vpop.permute.xlu1 %2190 }
 0x585   : > { %v2186_v1 = vpop.permute.xlu0 %2185  ;;  %v2193_v5 = vunpack.i.h.bf16 %v2191_v2  ;;  %v2192_v6 = vunpack.i.l.bf16 %v2191_v2 }
 0x586   : > { %v2188_v35 = vunpack.i.h.bf16 %v2186_v1  ;;  %v2187_v36 = vunpack.i.l.bf16 %v2186_v1 }
 0x588   : > { %v1395_v3 = vsel %vm616_vm0, %v1861_v27, %v2188_v35  ;;  %v1394_v4 = vsel %vm616_vm0, %v1118_v28, %v2187_v36 }
 0x589   : > { %v2196_v7 = vpop.permute.xlu0 %2195  ;;  %v1397_v10 = vsel %vm1396_vm3, %v1394_v4, %v2192_v6  ;;  %v1398_v11 = vsel %vm1396_vm3, %v1395_v3, %v2193_v5 }
 0x58a   : > { %v2198_v8 = vunpack.i.h.bf16 %v2196_v7  ;;  %v2197_v9 = vunpack.i.l.bf16 %v2196_v7 }
 0x58c   : > { %v1400_v12 = vsel %vm1399_vm4, %v1397_v10, %v2197_v9  ;;  %v1401_v13 = vsel %vm1399_vm4, %v1398_v11, %v2198_v8 }
 0x58d   : > { %1915 = vmatprep.mubr.f32.mxu0 %v1400_v12 }
 0x58e   : > { %1916 = vmatmul.mubr.f32.vlgmr.msra.gmra.mrb[8].mxu0 %v1401_v13 }
 0x661   : > { %v1917_v15 = vpop.f32.mrb[8].mxu0 }
 0x662   : > { %v1497_v16 = vadd.f32 %v1917_v15, %v1716_v14  ;;  %v1491_v17 = vpop.f32.mrb[9].mxu0 }
 0x663   : > { %v1492_v18 = vadd.f32 %v1716_v14, %v1491_v17 }
 0x664   : > { %1501 = vst [vmem:[%s334_s12] sm:$0xff] %v1497_v16 }
 0x665   : > { %1500 = vst [vmem:[%s327_s8] sm:$0xff] %v1492_v18 }
 0x666   : > { %2386 = shalt.err (!%p2383_p13)
}
 0x667   : > { %s2387_s11 = scalar_lea.hbm %s2871_s10, 128  ;;  %s2391_s30 = scalar_lea.hbm %s2950_s6, 256 }
 0x668   : > { %p2388_p9 = scmp.ne.s32.totalorder %s2871_s10, %s2387_s11  ;;  %p2392_p6 = scmp.lt.u32.totalorder %s2871_s10, %s2950_s6 }
 0x669   : > { %p2393_p10 = scmp.lt.u32.totalorder %s2391_s30, %s2387_s11  ;;  %p2395_p4 = scmp.lt.u32.totalorder %s2387_s11, %s2871_s10 }
 0x66a   : > { %p2389_p0 = pnand %p2388_p9, %p2701_p8 }
 0x66b   : > { %p2394_p3 = por %p2393_p10, %p2392_p6 }
 0x66c   : > { %p2390_p11 = pneg %p2389_p0 }
 0x66d   : > { %p2396_p5 = por %p2395_p4, %p2394_p3 }
 0x66f   : > { %p2397_p7 = pnand %p2396_p5, %p2390_p11 }
 0x671   : > { %2400 = shalt.err (!%p2397_p7)
}
 0x672   : > { %2073 = dma.vmem_to_hbm [thread:$0]  (%p2701_p8), %s2873_s14, 128, %s2871_s10, %s1508_s27  }
 0x673   : > { %s1503_s29 = scalar_lea.sflag [#allocation4], %s2753_s15  ;;  %s2401_s19 = scalar_lea.vmem %s2880_s26, 128 }
 0x674   : > { %p2402_p12 = scmp.ne.s32.totalorder %s2880_s26, %s2401_s19  ;;  %s2495_s20 = smov [#allocation11]  }
 0x675   : > { %s2405_s13 = sshll.u32 %s2495_s20, 4  ;;  %s2406_s13 = int_to_ptr.vmem [resolvable:$false] %s2405_s13 }
 0x676   : > { %p2403_p2 = pnand %p2402_p12, %p2701_p8  ;;  %s2407_s11 = scalar_lea.vmem %s2406_s13, 256 }
 0x677   : > { %p2408_p13 = scmp.lt.s32.totalorder %s2880_s26, %s2406_s13  ;;  %p2409_p9 = scmp.lt.s32.totalorder %s2407_s11, %s2401_s19 }
 0x678   : > { %p2404_p1 = pneg %p2403_p2 }
 0x679   : > { %p2410_p0 = por %p2409_p9, %p2408_p13 }
 0x67b   : > { %p2411_p11 = pnand %p2410_p0, %p2404_p1 }
 0x67d   : > { %2414 = shalt.err (!%p2411_p11)
}
 0x67e   : > { %s2415_s15 = scalar_lea.hbm %s2878_s7, 128  ;;  %s2419_s27 = scalar_lea.hbm %s2949_s5, 256 }
 0x67f   : > { %p2416_p6 = scmp.ne.s32.totalorder %s2878_s7, %s2415_s15  ;;  %p2420_p4 = scmp.lt.u32.totalorder %s2878_s7, %s2949_s5 }
 0x680   : > { %p2421_p5 = scmp.lt.u32.totalorder %s2419_s27, %s2415_s15  ;;  %p2423_p12 = scmp.lt.u32.totalorder %s2415_s15, %s2878_s7 }
 0x681   : > { %p2417_p10 = pnand %p2416_p6, %p2701_p8 }
 0x682   : > { %p2422_p7 = por %p2421_p5, %p2420_p4 }
 0x683   : > { %p2418_p3 = pneg %p2417_p10 }
 0x684   : > { %p2424_p2 = por %p2423_p12, %p2422_p7 }
 0x686   : > { %p2425_p1 = pnand %p2424_p2, %p2418_p3 }
 0x688   : > { %2428 = shalt.err (!%p2425_p1)
}
 0x689   : > { %2072 = dma.vmem_to_hbm [thread:$0]  (%p2701_p8), %s2880_s26, 128, %s2878_s7, %s1503_s29  }
 0x68a PF: > { %s1546_s30 = sand.u32 1, %s2467_s21   ;;  %p2970_p13 = scmp.ne.s32.totalorder %s2955_s28, 0 }
 0x68b   : > { %p2971_p9 = scmp.ge.s32.totalorder %s2479_s24, 2  ;;  %s1547_s25 = scalar_lea.sflag [#allocation4], %s1546_s30 }
 0x68d   : > { %p2094_p0 = pnand %p2971_p9, %p2970_p13 }
 0x68f   : > { %2458 = dma.done.wait (!%p2094_p0), %s1547_s25, 128  }
 0x690   : > { %2460 = vsyncadd (!%p2094_p0), %s1547_s25, 4294967168  ;;  %s1556_s9 = scalar_lea.sflag [#allocation13], %s1546_s30 }
 0x691   : > { %2462 = dma.done.wait (!%p2094_p0), %s1556_s9, 128  }
 0x692   : > { %2464 = vsyncadd (!%p2094_p0), %s1556_s9, 4294967168  ;;  %p25_p8 = scmp.ge.s32.totalorder %s2688_s16, 4   ;;  %s2972_s21 = smov %s2471_s22 }
 0x693   : > { %s2973_s22 = smov %s2475_s23  ;;  %s2974_s23 = smov %s2697_s17 }
 0x694   : > { %s2975_s24 = smov %s2688_s16  ;;  %27 = sbr.rel (!%p25_p8) target bundleno = 9 (0x9), region = 118 }
 0x69b   :  { %1561 = vsyncpa [#allocation3], 1 }
 0x69c   :  { %1563 = vsyncpa [#allocation3 + $0x1], 1 }
 0x69d   :  { %1564 = vsyncpa [#allocation6], 1 }
 0x69e   :  { %1565 = vsyncpa [#allocation9], 1 }
 0x69f   :  { %1566 = vsyncpa [#allocation4], 1 }
 0x6a0   :  { %1568 = vsyncpa [#allocation4 + $0x1], 1 }
 0x6a1   :  { %1569 = vsyncpa [#allocation13], 1 }
 0x6a2   :  { %1571 = vsyncpa [#allocation13 + $0x1], 1 }

</bundles_post_ra>
